<compile_context>
chip_gen: v6e
topology: v6e:2x2x1
jax: 0.10.0
libtpu: 0.0.40
codegen_flags: <defaults>
</compile_context>

<pallas_src>
import functools

import jax
import jax.numpy as jnp
from jax.experimental import pallas as pl
from jax.experimental.pallas import tpu as pltpu


def _round_up(x, m):
    return (x + m - 1) // m * m


# --------------------------------------------------------------------------
# Kernel A: tiled global sum over the spatial axis.
#   x_ref:   (rt, st)  block of the (N*C, H*W) view of x
#   o_ref:   (rt, 1)   per-row spatial sum
#   acc_ref: (rt, 1)   VMEM accumulator, persists across the reduction axis
# --------------------------------------------------------------------------
def _pool_sum_kernel(x_ref, o_ref, acc_ref):
    @pl.when(pl.program_id(1) == 0)
    def _():
        acc_ref[...] = jnp.zeros_like(acc_ref)

    acc_ref[...] += jnp.sum(x_ref[...], axis=1, keepdims=True)

    @pl.when(pl.program_id(1) == pl.num_programs(1) - 1)
    def _():
        o_ref[...] = acc_ref[...].astype(o_ref.dtype)


def global_sum_rows(x2d, *, r_tile_max=256, s_tile_max=2048):
    """Per-row sum of a (R, S) array via a tiled, pipelined Pallas reduction."""
    r, s = x2d.shape

    if r <= r_tile_max:
        rt, r_pad = r, r                      # full dim: no (8,128) constraint
    else:
        rt = r_tile_max                       # multiple of 8
        r_pad = _round_up(r, rt)
    if s <= s_tile_max:
        st, s_pad = s, s
    else:
        st = s_tile_max                       # multiple of 128
        s_pad = _round_up(s, st)

    if (r_pad, s_pad) != (r, s):
        # zero padding: contributes 0 to sums; padded rows are sliced off below
        x2d = jnp.pad(x2d, ((0, r_pad - r), (0, s_pad - s)))

    grid = (r_pad // rt, s_pad // st)
    out = pl.pallas_call(
        _pool_sum_kernel,
        out_shape=jax.ShapeDtypeStruct((r_pad, 1), jnp.float32),
        grid_spec=pltpu.PrefetchScalarGridSpec(
            num_scalar_prefetch=0,
            grid=grid,
            in_specs=[pl.BlockSpec((rt, st), lambda i, j: (i, j))],
            out_specs=pl.BlockSpec((rt, 1), lambda i, j: (i, 0)),
            scratch_shapes=[pltpu.VMEM((rt, 1), jnp.float32)],
        ),
        compiler_params=pltpu.CompilerParams(
            dimension_semantics=("parallel", "arbitrary")),
    )(x2d)
    return out[:r]                            # (R, 1)


# --------------------------------------------------------------------------
# Kernel B: fused SE head on the pooled vector.
#   psum_ref: (N, C)       per-(n,c) spatial *sums*
#   w1_ref:   (C, C_mid)   fc1 weight,  b1_ref: (1, C_mid)
#   w2_ref:   (C_mid, C)   fc2 weight,  b2_ref: (1, C)
#   o_ref:    (N, C)       sigmoid gate
# --------------------------------------------------------------------------
def _se_fc_kernel(psum_ref, w1_ref, b1_ref, w2_ref, b2_ref, o_ref, *, inv_hw):
    pooled = psum_ref[...] * inv_hw           # mean = sum * (1/(H*W)), no divide
    h = jnp.dot(pooled, w1_ref[...], preferred_element_type=jnp.float32)
    h = jnp.maximum(h + b1_ref[...], 0.0)     # ReLU
    y = jnp.dot(h, w2_ref[...], preferred_element_type=jnp.float32) + b2_ref[...]
    o_ref[...] = (1.0 / (1.0 + jnp.exp(-y))).astype(o_ref.dtype)   # sigmoid


def se_head(pooled_sum, w1, b1, w2, b2, *, inv_hw):
    n, c = pooled_sum.shape
    kernel = functools.partial(_se_fc_kernel, inv_hw=inv_hw)
    vmem = pl.BlockSpec(memory_space=pltpu.MemorySpace.VMEM)
    return pl.pallas_call(
        kernel,
        out_shape=jax.ShapeDtypeStruct((n, c), jnp.float32),
        in_specs=[vmem] * 5,
        out_specs=vmem,
    )(pooled_sum, w1, b1, w2, b2)


# --------------------------------------------------------------------------
# Full SqueezeExcitation forward
# --------------------------------------------------------------------------
def squeeze_excitation_forward(x_nchw, params):
    n, c, h, w = x_nchw.shape
    # NCHW -> (N*C, H*W): contiguous view, no transpose / no extra HBM traffic.
    x2d = x_nchw.reshape(n * c, h * w).astype(jnp.float32)
    pooled_sum = global_sum_rows(x2d).reshape(n, c)
    gate = se_head(
        pooled_sum, params["w1"], params["b1"], params["w2"], params["b2"],
        inv_hw=1.0 / float(h * w))
    return gate.reshape(n, c, 1, 1)           # matches nn.Module output shape


# --------------------------------------------------------------------------
# Deterministic parameter init (nn.Conv2d default: kaiming_uniform a=sqrt(5)
# -> weight/bias ~ U(-1/sqrt(fan_in), 1/sqrt(fan_in)))
# --------------------------------------------------------------------------
def init_params(key, in_channels, se_ratio):
    c_mid = in_channels // se_ratio
    k1, k2, k3, k4 = jax.random.split(key, 4)

    def u(k, shape, fan_in):
        bound = 1.0 / (fan_in ** 0.5)
        return jax.random.uniform(k, shape, jnp.float32, -bound, bound)

    # fc1: torch weight (c_mid, c_in, 1, 1) -> here (c_in, c_mid)
    w1 = u(k1, (in_channels, c_mid), in_channels)
    b1 = u(k2, (1, c_mid), in_channels)
    # fc2: torch weight (c_in, c_mid, 1, 1) -> here (c_mid, c_in)
    w2 = u(k3, (c_mid, in_channels), c_mid)
    b2 = u(k4, (1, in_channels), c_mid)
    return {"w1": w1, "b1": b1, "w2": w2, "b2": b2}


if __name__ == "__main__":
    key = jax.random.PRNGKey(0)
    k_x, k_p = jax.random.split(key)

    N, C, H, W = 2, 16, 16, 16
    SE_RATIO = 4

    x = jax.random.normal(k_x, (N, C, H, W), jnp.float32)
    params = init_params(k_p, C, SE_RATIO)

    out = squeeze_excitation_forward(x, params)
    out = jax.block_until_ready(out)
    assert out.shape == (N, C, 1, 1), out.shape

    # Pure-JAX reference check of the forward semantics.
    pooled_ref = jnp.mean(x, axis=(2, 3))                                  # (N, C)
    h_ref = jnp.maximum(pooled_ref @ params["w1"] + params["b1"], 0.0)
    ref = jax.nn.sigmoid(h_ref @ params["w2"] + params["b2"]).reshape(N, C, 1, 1)
    assert jnp.allclose(out, ref, rtol=2e-3, atol=2e-3), float(
        jnp.max(jnp.abs(out - ref)))

    print("KERNEL_OK")
</pallas_src>

<mosaic_0001>
module attributes {stable_mosaic.version = 11 : i64} {
  func.func @_pool_sum_kernel(%arg0: i32, %arg1: i32, %arg2: memref<32x256xf32, #tpu.memory_space<vmem>>, %arg3: memref<32x1xf32, #tpu.memory_space<vmem>>, %arg4: memref<32x1xf32, #tpu.memory_space<vmem>>) attributes {dimension_semantics = [#tpu.dimension_semantics<parallel>, #tpu.dimension_semantics<arbitrary>], iteration_bounds = array<i64: 1, 1>, scalar_prefetch = 0 : i64, scratch_operands = 1 : i64, tpu.core_type = #tpu.core_type<tc>, window_params = [{transform_indices = @transform_0, window_bounds = array<i64: 32, 256>}, {transform_indices = @transform_1, window_bounds = array<i64: 32, 1>}]} {
    %c0_i32 = arith.constant 0 : i32
    %0 = arith.cmpi eq, %arg1, %c0_i32 : i32
    %1 = arith.extui %0 : i1 to i32
    %c0_i32_0 = arith.constant 0 : i32
    %2 = arith.cmpi ne, %1, %c0_i32_0 : i32
    scf.if %2 {
      %cst_8 = arith.constant 0.000000e+00 : f32
      %12 = vector.broadcast %cst_8 : f32 to vector<32x1xf32>
      %c0_9 = arith.constant 0 : index
      %c0_10 = arith.constant 0 : index
      %13 = vector.load %arg4[%c0_9, %c0_10] : memref<32x1xf32, #tpu.memory_space<vmem>>, vector<32x1xf32>
      tpu.vector_store %arg4[%c0_9, %c0_10], %12 {strides = array<i32>} : memref<32x1xf32, #tpu.memory_space<vmem>>, vector<32x1xf32>,
    } else {
    }
    %c0 = arith.constant 0 : index
    %c0_1 = arith.constant 0 : index
    %3 = vector.load %arg4[%c0, %c0_1] : memref<32x1xf32, #tpu.memory_space<vmem>>, vector<32x1xf32>
    %c0_2 = arith.constant 0 : index
    %c0_3 = arith.constant 0 : index
    %4 = vector.load %arg2[%c0_2, %c0_3] : memref<32x256xf32, #tpu.memory_space<vmem>>, vector<32x256xf32>
    %cst = arith.constant dense<0.000000e+00> : vector<32xf32>
    %5 = vector.multi_reduction <add>, %4, %cst [1] : vector<32x256xf32> to vector<32xf32>
    %6 = vector.shape_cast %5 : vector<32xf32> to vector<32x1xf32>
    %7 = arith.addf %3, %6 : vector<32x1xf32>
    %c0_4 = arith.constant 0 : index
    %c0_5 = arith.constant 0 : index
    %8 = vector.load %arg4[%c0_4, %c0_5] : memref<32x1xf32, #tpu.memory_space<vmem>>, vector<32x1xf32>
    tpu.vector_store %arg4[%c0_4, %c0_5], %7 {strides = array<i32>} : memref<32x1xf32, #tpu.memory_space<vmem>>, vector<32x1xf32>,
    %c0_i32_6 = arith.constant 0 : i32
    %9 = arith.cmpi eq, %arg1, %c0_i32_6 : i32
    %10 = arith.extui %9 : i1 to i32
    %c0_i32_7 = arith.constant 0 : i32
    %11 = arith.cmpi ne, %10, %c0_i32_7 : i32
    scf.if %11 {
      %c0_8 = arith.constant 0 : index
      %c0_9 = arith.constant 0 : index
      %12 = vector.load %arg4[%c0_8, %c0_9] : memref<32x1xf32, #tpu.memory_space<vmem>>, vector<32x1xf32>
      %c0_10 = arith.constant 0 : index
      %c0_11 = arith.constant 0 : index
      %13 = vector.load %arg3[%c0_10, %c0_11] : memref<32x1xf32, #tpu.memory_space<vmem>>, vector<32x1xf32>
      tpu.vector_store %arg3[%c0_10, %c0_11], %12 {strides = array<i32>} : memref<32x1xf32, #tpu.memory_space<vmem>>, vector<32x1xf32>,
    } else {
    }
    return
  }
  func.func @transform_0(%arg0: i32, %arg1: i32) -> (i32, i32) {
    %c0_i32 = arith.constant 0 : i32
    return %arg0, %arg1 : i32, i32
  }
  func.func @transform_1(%arg0: i32, %arg1: i32) -> (i32, i32) {
    %c0_i32 = arith.constant 0 : i32
    %c0_i32_0 = arith.constant 0 : i32
    return %arg0, %c0_i32 : i32, i32
  }
}

</mosaic_0001>

<bundles_post_ra>
// kernel: tpu_custom_call.1
= control target key start
LH: loop header
LB: loop body
LE: loop exit
PB: predicated region body
PF: predicated region fallthrough
CT: control target
= control target key end

     0   :  { %6 = vsyncpa [#allocation4], 0  ;;  %s106_s6 = smov [#allocation3]   ;;  %s147_s0 = inlined_call_operand.hbm [shape: f32[32,256], index: 0, kind: input, shape index: {}]   ;;  %s148_s1 = inlined_call_operand.vmem [shape: f32[32,1], index: 1, kind: output, shape index: {}]  }
   0x1   :  { %s12_s7 = sshll.u32 %s106_s6, 4  ;;  %s13_s7 = int_to_ptr.vmem [resolvable:$true] %s12_s7 }
   0x2   :  { %s92_s8 = scalar_lea.vmem %s13_s7, 1024  ;;  %p97_p1 = scmp.lt.s32.totalorder %s13_s7, %s13_s7 }
   0x3   :  { %p93_p0 = scmp.ne.s32.totalorder %s13_s7, %s92_s8  ;;  %p98_p2 = scmp.lt.s32.totalorder %s92_s8, %s92_s8 }
   0x5   :  { %p99_p3 = por %p98_p2, %p97_p1 }
   0x7   :  { %p100_p4 = pnand %p99_p3, %p93_p0 }
   0x9   :  { %103 = shalt.err (!%p100_p4)
}
   0xa   :  { %s107_s9 = smov 256   ;;  %s108_s10 = smov 16  }
   0xb   :  { %18 = dma.hbm_to_vmem [thread:$0]  %s147_s0, 1024, %s13_s7, [#allocation4], %s107_s9, %s107_s9, %s108_s10  }
   0xc   :  { %104 = dma.done.wait [#allocation4], 1024  }
   0xd   :  { %105 = vsyncadd [#allocation4], 4294966272  ;;  %vm26_vm0 = vcmask 7168   ;;  %v109_v0 = vmov 0.0   ;;  %v39_v1 = vld [vmem:[#allocation3 + $0x20] sm:$0xff]  ;;  %v40_v2 = vld [vmem:[#allocation3 + $0x28] sm:$0xff] }
   0xe   :  { %29 = vst.msk [vmem:[#allocation2 + $0x10] sm:$0xff] %vm26_vm0, %v109_v0  ;;  %27 = vst.msk [vmem:[#allocation2] sm:$0xff] %vm26_vm0, %v109_v0  ;;  %v35_v3 = vld [vmem:[#allocation3] sm:$0xff]  ;;  %v49_v4 = vadd.f32 %v40_v2, %v39_v1  ;;  %v36_v5 = vld [vmem:[#allocation3 + $0x8] sm:$0xff] }
   0xf   :  { %28 = vst.msk [vmem:[#allocation2 + $0x8] sm:$0xff] %vm26_vm0, %v109_v0  ;;  %30 = vst.msk [vmem:[#allocation2 + $0x18] sm:$0xff] %vm26_vm0, %v109_v0  ;;  %v41_v6 = vld [vmem:[#allocation3 + $0x30] sm:$0xff]  ;;  %v42_v7 = vld [vmem:[#allocation3 + $0x38] sm:$0xff]  ;;  %v43_v8 = vadd.f32 %v36_v5, %v35_v3 }
  0x10   :  { %v37_v9 = vld [vmem:[#allocation3 + $0x10] sm:$0xff]  ;;  %v38_v10 = vld [vmem:[#allocation3 + $0x18] sm:$0xff]  ;;  %50 = vadd.xlane.f32.xlu1 %v49_v4  ;;  %v52_v11 = vadd.f32 %v42_v7, %v41_v6 }
  0x11   :  { %44 = vadd.xlane.f32.xlu0 %v43_v8  ;;  %v46_v12 = vadd.f32 %v38_v10, %v37_v9 }
  0x14   :  { %53 = vadd.xlane.f32.xlu1 %v52_v11 }
  0x15   :  { %47 = vadd.xlane.f32.xlu0 %v46_v12  ;;  %v33_v13 = vld [vmem:[#allocation2 + $0x10] sm:$0xff]  ;;  %v31_v14 = vld [vmem:[#allocation2] sm:$0xff] }
  0x16   :  { %v34_v19 = vld [vmem:[#allocation2 + $0x18] sm:$0xff]  ;;  %v32_v20 = vld [vmem:[#allocation2 + $0x8] sm:$0xff] }
  0x99   :  { %v51_v15 = vpop.xlane.xlu1 %50 }
  0x9a   :  { %v57_v16 = vadd.f32 %v51_v15, %v33_v13  ;;  %v45_v17 = vpop.xlane.xlu0 %44 }
  0x9b   :  { %v55_v18 = vadd.f32 %v45_v17, %v31_v14 }
  0x9c   :  { %62 = vst.msk [vmem:[#allocation2 + $0x10] sm:$0xff] %vm26_vm0, %v57_v16 }
  0x9d   :  { %60 = vst.msk [vmem:[#allocation2] sm:$0xff] %vm26_vm0, %v55_v18  ;;  %v54_v21 = vpop.xlane.xlu1 %53 }
  0x9e   :  { %v58_v22 = vadd.f32 %v54_v21, %v34_v19  ;;  %v48_v23 = vpop.xlane.xlu0 %47 }
  0x9f   :  { %v56_v24 = vadd.f32 %v48_v23, %v32_v20 }
  0xa0   :  { %63 = vst.msk [vmem:[#allocation2 + $0x18] sm:$0xff] %vm26_vm0, %v58_v22 }
  0xa1   :  { %61 = vst.msk [vmem:[#allocation2 + $0x8] sm:$0xff] %vm26_vm0, %v56_v24 }
  0xa3   :  { %v69_v25 = vld [vmem:[#allocation2 + $0x10] sm:$0xff] }
  0xa4   :  { %73 = vst.msk [vmem:[%s148_s1 + $0x10] sm:$0xff] %vm26_vm0, %v69_v25  ;;  %v67_v26 = vld [vmem:[#allocation2] sm:$0xff] }
  0xa5   :  { %71 = vst.msk [vmem:[%s148_s1] sm:$0xff] %vm26_vm0, %v67_v26 }
  0xa7   :  { %v70_v27 = vld [vmem:[#allocation2 + $0x18] sm:$0xff] }
  0xa8   :  { %74 = vst.msk [vmem:[%s148_s1 + $0x18] sm:$0xff] %vm26_vm0, %v70_v27  ;;  %v68_v28 = vld [vmem:[#allocation2 + $0x8] sm:$0xff] }
  0xa9   :  { %72 = vst.msk [vmem:[%s148_s1 + $0x8] sm:$0xff] %vm26_vm0, %v68_v28 }
  0xaa   :  { %79 = vsyncpa [#allocation4], 1 }

</bundles_post_ra>
